<compile_context>
chip_gen: v5e
topology: v5e:2x2
jax: 0.10.0
libtpu: 0.0.40
codegen_flags: <defaults>
</compile_context>

<pallas_src>
import numpy as np
import jax
import jax.numpy as jnp
from jax.experimental import pallas as pl
from jax.experimental.pallas import tpu as pltpu

# Fixed conv weights from the PyTorch module's __init__ (2x2, single in/out channel).
W1 = ((0.239, 0.1593), (0.5377, 0.0))
W2 = ((-0.239, -0.3585), (-0.5377, 0.239))


def _layer_matrix(h, w, weights):
    """Dense (h*w, hp*wp) matrix of one Conv2d(k=2, stride=1, pad=1) + AvgPool2d(2,2)."""
    hp, wp = (h + 1) // 2, (w + 1) // 2
    m = np.zeros((h * w, hp * wp), np.float64)
    for i in range(hp):
        for j in range(wp):
            for di in range(2):                       # 2x2 avg-pool window
                for dj in range(2):
                    p, q = 2 * i + di, 2 * j + dj     # conv-output coordinate
                    for a in range(2):                # 2x2 cross-correlation taps
                        for b in range(2):
                            r, c = p + a - 1, q + b - 1   # input coordinate (pad=1)
                            if 0 <= r < h and 0 <= c < w:
                                m[r * w + c, i * wp + j] += 0.25 * weights[a][b]
    return m


def _composite_matrix_T(h, w):
    """(Hp2*Wp2, H*W) transposed composition of layer1 and layer2."""
    hp1, wp1 = (h + 1) // 2, (w + 1) // 2
    m = _layer_matrix(h, w, W1) @ _layer_matrix(hp1, wp1, W2)   # (h*w, hp2*wp2)
    return jnp.asarray(m.T, dtype=jnp.float32)


def _cnn_matmul_kernel(mT_ref, x_ref, o_ref):
    # One MXU matmul per batch tile; output store is lane-dense (last dim = B_TILE).
    o_ref[...] = jnp.dot(mT_ref[...], x_ref[...], preferred_element_type=jnp.float32)


def _round_up(x, m):
    return (x + m - 1) // m * m


def cnn_forward(x, *, b_tile=None):
    """x: NCHW float32 with C == 1 (as the PyTorch module requires). Returns NCHW."""
    N, C, H, W = x.shape
    assert C == 1, "module is defined for in_channels=1"
    Hp1, Wp1 = (H + 1) // 2, (W + 1) // 2
    Hp2, Wp2 = (Hp1 + 1) // 2, (Wp1 + 1) // 2
    K_in, K_out = H * W, Hp2 * Wp2

    mT = _composite_matrix_T(H, W)                       # (K_out, K_in) composite weights

    if b_tile is None:
        # Lane-dense batch tile: multiple of 128, capped so VMEM stays tiny even on v7x.
        b_tile = min(512, _round_up(max(N, 1), 128))
    n_pad = _round_up(max(N, 1), b_tile)

    # One flattened image per lane-column; pad batch up to a tile multiple.
    x_cols = x.astype(jnp.float32).reshape(N, K_in).T    # (K_in, N)
    x_cols = jnp.pad(x_cols, ((0, 0), (0, n_pad - N)))

    out = pl.pallas_call(
        _cnn_matmul_kernel,
        out_shape=jax.ShapeDtypeStruct((K_out, n_pad), jnp.float32),
        grid=(n_pad // b_tile,),
        in_specs=[
            pl.BlockSpec((K_out, K_in), lambda t: (0, 0)),    # composite weights (resident)
            pl.BlockSpec((K_in, b_tile), lambda t: (0, t)),   # batch tile of flattened images
        ],
        out_specs=pl.BlockSpec((K_out, b_tile), lambda t: (0, t)),   # lane-dense store
        compiler_params=pltpu.CompilerParams(dimension_semantics=("parallel",)),
    )(mT, x_cols)

    # Back to NCHW.
    return out[:, :N].T.reshape(N, 1, Hp2, Wp2)


if __name__ == "__main__":
    key = jax.random.PRNGKey(0)
    x = jax.random.normal(key, (2, 1, 16, 16), dtype=jnp.float32)

    out = jax.block_until_ready(cnn_forward(x))

    # Independent plain-JAX reference of the original two-layer module
    # (lax conv is cross-correlation, same convention as torch).
    def ref(x):
        w1 = jnp.asarray(W1, jnp.float32).reshape(1, 1, 2, 2)
        w2 = jnp.asarray(W2, jnp.float32).reshape(1, 1, 2, 2)

        def layer(x, w):
            y = jax.lax.conv_general_dilated(
                x, w, window_strides=(1, 1), padding=[(1, 1), (1, 1)],
                dimension_numbers=("NCHW", "OIHW", "NCHW"))
            n, c, h, wd = y.shape
            y = y[:, :, :(h // 2) * 2, :(wd // 2) * 2]
            return y.reshape(n, c, h // 2, 2, wd // 2, 2).mean(axis=(3, 5))

        return layer(layer(x, w1), w2)

    np.testing.assert_allclose(np.asarray(out), np.asarray(ref(x)),
                               rtol=5e-5, atol=5e-5)
    print("KERNEL_OK")
</pallas_src>

<mosaic_0001>
module attributes {stable_mosaic.version = 11 : i64} {
  func.func @_cnn_matmul_kernel(%arg0: i32, %arg1: memref<16x256xf32, #tpu.memory_space<vmem>>, %arg2: memref<256x128xf32, #tpu.memory_space<vmem>>, %arg3: memref<16x128xf32, #tpu.memory_space<vmem>>) attributes {dimension_semantics = [#tpu.dimension_semantics<parallel>], iteration_bounds = array<i64: 1>, scalar_prefetch = 0 : i64, scratch_operands = 0 : i64, tpu.core_type = #tpu.core_type<tc>, window_params = [{pipeline_mode = #tpu.pipeline_mode<synchronous>, transform_indices = @transform_0, window_bounds = array<i64: 16, 256>}, {transform_indices = @transform_1, window_bounds = array<i64: 256, 128>}, {transform_indices = @transform_2, window_bounds = array<i64: 16, 128>}]} {
    %c0 = arith.constant 0 : index
    %c0_0 = arith.constant 0 : index
    %0 = vector.load %arg1[%c0, %c0_0] : memref<16x256xf32, #tpu.memory_space<vmem>>, vector<16x256xf32>
    %c0_1 = arith.constant 0 : index
    %c0_2 = arith.constant 0 : index
    %1 = vector.load %arg2[%c0_1, %c0_2] : memref<256x128xf32, #tpu.memory_space<vmem>>, vector<256x128xf32>
    %cst = arith.constant dense<0.000000e+00> : vector<16x128xf32>
    %2 = tpu.matmul %0, %1, %cst {dimension_numbers = #tpu.dot_dimension_numbers<[1], [0], [0], [1], [0, 0, 1, 1], [], []>} : vector<16x256xf32>, vector<256x128xf32>, vector<16x128xf32> -> vector<16x128xf32>
    %c0_3 = arith.constant 0 : index
    %c0_4 = arith.constant 0 : index
    %3 = vector.load %arg3[%c0_3, %c0_4] : memref<16x128xf32, #tpu.memory_space<vmem>>, vector<16x128xf32>
    tpu.vector_store %arg3[%c0_3, %c0_4], %2 {strides = array<i32>} : memref<16x128xf32, #tpu.memory_space<vmem>>, vector<16x128xf32>,
    return
  }
  func.func @transform_0(%arg0: i32) -> (i32, i32) {
    %c0_i32 = arith.constant 0 : i32
    %c0_i32_0 = arith.constant 0 : i32
    %c0_i32_1 = arith.constant 0 : i32
    return %c0_i32, %c0_i32_0 : i32, i32
  }
  func.func @transform_1(%arg0: i32) -> (i32, i32) {
    %c0_i32 = arith.constant 0 : i32
    %c0_i32_0 = arith.constant 0 : i32
    return %c0_i32, %arg0 : i32, i32
  }
  func.func @transform_2(%arg0: i32) -> (i32, i32) {
    %c0_i32 = arith.constant 0 : i32
    %c0_i32_0 = arith.constant 0 : i32
    return %c0_i32, %arg0 : i32, i32
  }
}

</mosaic_0001>

<bundles_post_ra>
// kernel: tpu_custom_call.1
= control target key start
LH: loop header
LB: loop body
LE: loop exit
PB: predicated region body
PF: predicated region fallthrough
CT: control target
= control target key end

     0   :  { %7 = vsyncpa [#allocation3], 0  ;;  %s302_s0 = inlined_call_operand.hbm [shape: f32[16,256], index: 0, kind: input, shape index: {}]   ;;  %s303_s1 = inlined_call_operand.hbm [shape: f32[256,128], index: 1, kind: input, shape index: {}]   ;;  %s304_s2 = inlined_call_operand.hbm [shape: f32[16,128], index: 2, kind: output, shape index: {}]  }
   0x1   :  { %8 = vsyncpa [#allocation6], 0 }
   0x2   :  { %9 = vsyncpa [#allocation4], 0  ;;  %s14_s11 = sshll.u32 %s302_s0, 4  ;;  %s265_s12 = smov [#allocation2]   ;;  %s15_s11 = int_to_ptr.hbm [resolvable:$true] %s14_s11 }
   0x3   :  { %s16_s13 = sshll.u32 %s265_s12, 4  ;;  %s27_s16 = sshll.u32 %s303_s1, 4  ;;  %s17_s13 = int_to_ptr.vmem [resolvable:$true] %s16_s13  ;;  %s28_s16 = int_to_ptr.hbm [resolvable:$true] %s27_s16 }
   0x4   :  { %s266_s17 = smov 256   ;;  %s267_s18 = smov 16  }
   0x5   :  { %22 = dma.hbm_to_vmem [thread:$0]  %s15_s11, 512, %s17_s13, [#allocation3], %s266_s17, %s266_s17, %s267_s18  }
   0x6   :  { %s268_s19 = smov [#allocation5]   ;;  %s269_s21 = smov 128  }
   0x7   :  { %s29_s20 = sshll.u32 %s268_s19, 4  ;;  %s270_s22 = smov 8   ;;  %s30_s20 = int_to_ptr.vmem [resolvable:$true] %s29_s20 }
   0x8   :  { %35 = dma.hbm_to_vmem [thread:$0]  %s28_s16, 4096, %s30_s20, [#allocation6], %s269_s21, %s269_s21, %s270_s22  }
   0x9   :  { %259 = dma.done.wait [#allocation3], 512  }
   0xa   :  { %260 = vsyncadd [#allocation3], 4294966784 }
   0xb   :  { %261 = dma.done.wait [#allocation6], 4096  }
   0xc   :  { %262 = vsyncadd [#allocation6], 4294963200  ;;  %v63_v0 = vld [vmem:[#allocation5 + $0x78] sm:$0xff]  ;;  %v62_v2 = vld [vmem:[#allocation5 + $0x70] sm:$0xff]  ;;  %s271_s0 = smov [#allocation7]   ;;  %s134_s25 = sshll.u32 %s304_s2, 4  ;;  %s135_s25 = int_to_ptr.hbm [resolvable:$true] %s134_s25 }
   0xd   :  { %v79_v1 = vld [vmem:[#allocation5 + $0xf8] sm:$0xff]  ;;  %148 = vmatpush.msra.mxu2 %v63_v0  ;;  %v78_v3 = vld [vmem:[#allocation5 + $0xf0] sm:$0xff]  ;;  %v61_v4 = vld [vmem:[#allocation5 + $0x68] sm:$0xff]  ;;  %80 = vmatpush.msra.mxu0 %v63_v0  ;;  %s132_s1 = sshll.u32 %s271_s0, 4  ;;  %s133_s1 = int_to_ptr.vmem [resolvable:$true] %s132_s1 }
   0xe   :  { %164 = vmatpush.msra.mxu3 %v79_v1  ;;  %v77_v5 = vld [vmem:[#allocation5 + $0xe8] sm:$0xff]  ;;  %103 = vmatpush.msra.mxu1 %v79_v1  ;;  %v60_v6 = vld [vmem:[#allocation5 + $0x60] sm:$0xff]  ;;  %v59_v8 = vld [vmem:[#allocation5 + $0x58] sm:$0xff] }
   0xf   :  { %149 = vmatpush.msra.mxu2 %v62_v2  ;;  %v76_v7 = vld [vmem:[#allocation5 + $0xe0] sm:$0xff]  ;;  %81 = vmatpush.msra.mxu0 %v62_v2  ;;  %v75_v9 = vld [vmem:[#allocation5 + $0xd8] sm:$0xff]  ;;  %v58_v10 = vld [vmem:[#allocation5 + $0x50] sm:$0xff] }
  0x10   :  { %165 = vmatpush.msra.mxu3 %v78_v3  ;;  %104 = vmatpush.msra.mxu1 %v78_v3  ;;  %v74_v11 = vld [vmem:[#allocation5 + $0xd0] sm:$0xff]  ;;  %v57_v12 = vld [vmem:[#allocation5 + $0x48] sm:$0xff]  ;;  %v56_v14 = vld [vmem:[#allocation5 + $0x40] sm:$0xff] }
  0x11   :  { %150 = vmatpush.msra.mxu2 %v61_v4  ;;  %82 = vmatpush.msra.mxu0 %v61_v4  ;;  %v73_v13 = vld [vmem:[#allocation5 + $0xc8] sm:$0xff]  ;;  %v72_v15 = vld [vmem:[#allocation5 + $0xc0] sm:$0xff]  ;;  %v55_v16 = vld [vmem:[#allocation5 + $0x38] sm:$0xff] }
  0x12   :  { %166 = vmatpush.msra.mxu3 %v77_v5  ;;  %105 = vmatpush.msra.mxu1 %v77_v5  ;;  %v71_v17 = vld [vmem:[#allocation5 + $0xb8] sm:$0xff]  ;;  %v54_v18 = vld [vmem:[#allocation5 + $0x30] sm:$0xff]  ;;  %v53_v20 = vld [vmem:[#allocation5 + $0x28] sm:$0xff] }
  0x13   :  { %151 = vmatpush.msra.mxu2 %v60_v6  ;;  %83 = vmatpush.msra.mxu0 %v60_v6  ;;  %v70_v19 = vld [vmem:[#allocation5 + $0xb0] sm:$0xff]  ;;  %v69_v21 = vld [vmem:[#allocation5 + $0xa8] sm:$0xff]  ;;  %v52_v22 = vld [vmem:[#allocation5 + $0x20] sm:$0xff] }
  0x14   :  { %167 = vmatpush.msra.mxu3 %v76_v7  ;;  %106 = vmatpush.msra.mxu1 %v76_v7  ;;  %v68_v23 = vld [vmem:[#allocation5 + $0xa0] sm:$0xff]  ;;  %v51_v24 = vld [vmem:[#allocation5 + $0x18] sm:$0xff]  ;;  %v50_v26 = vld [vmem:[#allocation5 + $0x10] sm:$0xff] }
  0x15   :  { %152 = vmatpush.msra.mxu2 %v59_v8  ;;  %84 = vmatpush.msra.mxu0 %v59_v8  ;;  %v67_v25 = vld [vmem:[#allocation5 + $0x98] sm:$0xff]  ;;  %v66_v27 = vld [vmem:[#allocation5 + $0x90] sm:$0xff]  ;;  %v49_v28 = vld [vmem:[#allocation5 + $0x8] sm:$0xff] }
  0x16   :  { %168 = vmatpush.msra.mxu3 %v75_v9  ;;  %107 = vmatpush.msra.mxu1 %v75_v9  ;;  %v65_v29 = vld [vmem:[#allocation5 + $0x88] sm:$0xff]  ;;  %v48_v30 = vld [vmem:[#allocation5] sm:$0xff]  ;;  %v46_v32 = vld [vmem:[#allocation2 + $0x10] sm:$0xff] }
  0x17   :  { %153 = vmatpush.msra.mxu2 %v58_v10  ;;  %85 = vmatpush.msra.mxu0 %v58_v10  ;;  %v64_v31 = vld [vmem:[#allocation5 + $0x80] sm:$0xff]  ;;  %v47_v33 = vld [vmem:[#allocation2 + $0x18] sm:$0xff]  ;;  %v45_v35 = vld [vmem:[#allocation2 + $0x8] sm:$0xff] }
  0x18   :  { %169 = vmatpush.msra.mxu3 %v74_v11  ;;  %108 = vmatpush.msra.mxu1 %v74_v11  ;;  %v44_v34 = vld [vmem:[#allocation2] sm:$0xff] }
  0x19   :  { %154 = vmatpush.msra.mxu2 %v57_v12  ;;  %86 = vmatpush.msra.mxu0 %v57_v12 }
  0x1a   :  { %170 = vmatpush.msra.mxu3 %v73_v13  ;;  %109 = vmatpush.msra.mxu1 %v73_v13 }
  0x1b   :  { %155 = vmatpush.msra.mxu2 %v56_v14  ;;  %87 = vmatpush.msra.mxu0 %v56_v14 }
  0x1c   :  { %171 = vmatpush.msra.mxu3 %v72_v15  ;;  %110 = vmatpush.msra.mxu1 %v72_v15 }
  0x1d   :  { %156 = vmatpush.msra.mxu2 %v55_v16  ;;  %88 = vmatpush.msra.mxu0 %v55_v16 }
  0x1e   :  { %172 = vmatpush.msra.mxu3 %v71_v17  ;;  %111 = vmatpush.msra.mxu1 %v71_v17 }
  0x1f   :  { %157 = vmatpush.msra.mxu2 %v54_v18  ;;  %89 = vmatpush.msra.mxu0 %v54_v18 }
  0x20   :  { %173 = vmatpush.msra.mxu3 %v70_v19  ;;  %112 = vmatpush.msra.mxu1 %v70_v19 }
  0x21   :  { %158 = vmatpush.msra.mxu2 %v53_v20  ;;  %90 = vmatpush.msra.mxu0 %v53_v20 }
  0x22   :  { %174 = vmatpush.msra.mxu3 %v69_v21  ;;  %113 = vmatpush.msra.mxu1 %v69_v21 }
  0x23   :  { %159 = vmatpush.msra.mxu2 %v52_v22  ;;  %91 = vmatpush.msra.mxu0 %v52_v22 }
  0x24   :  { %175 = vmatpush.msra.mxu3 %v68_v23  ;;  %114 = vmatpush.msra.mxu1 %v68_v23 }
  0x25   :  { %160 = vmatpush.msra.mxu2 %v51_v24  ;;  %92 = vmatpush.msra.mxu0 %v51_v24 }
  0x26   :  { %176 = vmatpush.msra.mxu3 %v67_v25  ;;  %115 = vmatpush.msra.mxu1 %v67_v25 }
  0x27   :  { %161 = vmatpush.msra.mxu2 %v50_v26  ;;  %93 = vmatpush.msra.mxu0 %v50_v26 }
  0x28   :  { %177 = vmatpush.msra.mxu3 %v66_v27  ;;  %116 = vmatpush.msra.mxu1 %v66_v27 }
  0x29   :  { %162 = vmatpush.msra.mxu2 %v49_v28  ;;  %94 = vmatpush.msra.mxu0 %v49_v28 }
  0x2a   :  { %178 = vmatpush.msra.mxu3 %v65_v29  ;;  %117 = vmatpush.msra.mxu1 %v65_v29 }
  0x2b   :  { %163 = vmatpush.msra.mxu2 %v48_v30  ;;  %95 = vmatpush.msra.mxu0 %v48_v30 }
  0x2c   :  { %179 = vmatpush.msra.mxu3 %v64_v31  ;;  %99 = vmatmul.f32.vlgmr.msra.gmra.mxu2 %v46_v32 }
  0x2d   :  { %122 = vmatmul.f32.vlgmr.msra.gmra.mxu3 %v47_v33  ;;  %118 = vmatpush.msra.mxu1 %v64_v31 }
  0x2e   :  { %96 = vmatmul.f32.vlgmr.msra.gmra.mxu0 %v44_v34  ;;  %119 = vmatmul.f32.vlgmr.msra.gmra.mxu1 %v45_v35 }
  0xab   :  { %v97_v36 = vpop.f32.mrf.mxu0  ;;  %v120_v37 = vpop.f32.mrf.mxu1 }
  0xac   :  { %v121_v38 = vadd.f32 %v120_v37, %v97_v36 }
  0xae   :  { %126 = vst [vmem:[#allocation7] sm:$0xff] %v121_v38 }
  0xaf   :  { %v100_v39 = vpop.f32.mrf.mxu2 }
  0xb0   :  { %v123_v40 = vpop.f32.mrf.mxu3 }
  0xb1   :  { %v124_v41 = vadd.f32 %v123_v40, %v100_v39 }
  0xb3   :  { %127 = vst [vmem:[#allocation7 + $0x8] sm:$0xff] %v124_v41 }
  0xb4   :  { %140 = dma.vmem_to_hbm [thread:$0]  %s133_s1, 256, %s135_s25, [#allocation4], %s269_s21, %s269_s21, %s270_s22  }
  0xb5   :  { %263 = dma.done.wait [#allocation4], 256  }
  0xb6   :  { %264 = vsyncadd [#allocation4], 4294967040 }
  0xb7   :  { %145 = vsyncpa [#allocation3], 1 }
  0xb8   :  { %146 = vsyncpa [#allocation6], 1 }
  0xb9   :  { %147 = vsyncpa [#allocation4], 1 }

</bundles_post_ra>
